<compile_context>
chip_gen: v7x
topology: tpu7x:2x2x1
jax: 0.10.0
libtpu: 0.0.40
codegen_flags: <defaults>
</compile_context>

<pallas_src>
import math

import jax
import jax.numpy as jnp
from jax.experimental import pallas as pl
from jax.experimental.pallas import tpu as pltpu


_VMEM_CAP_BYTES = 56 * 1024 * 1024      # stay safely under v7x's 64 MiB
_VMEM_FLOOR_BYTES = 16 * 1024 * 1024


def _pick_tile(dim, pref, align):
    """Largest `align`-aligned tile <= pref that evenly divides dim; else full dim."""
    if dim <= pref:
        return dim
    t = (pref // align) * align
    while t >= align:
        if dim % t == 0:
            return t
        t -= align
    # TODO(synk): pad ragged dims to a multiple of `align` with masked tails
    # instead of falling back to the full (untiled) dimension.
    return dim


def _vmem_limit(est_bytes):
    """Per-kernel scoped-VMEM limit derived from tile footprint, with headroom."""
    return int(min(_VMEM_CAP_BYTES, max(_VMEM_FLOOR_BYTES, int(est_bytes * 1.5) + (2 << 20))))


# --------------------------- tiled linear kernel --------------------------- #

def _linear_kernel(x_ref, w_ref, b_ref, o_ref, acc_ref):
    @pl.when(pl.program_id(2) == 0)
    def _():
        acc_ref[...] = jnp.zeros_like(acc_ref)

    acc_ref[...] += jnp.dot(x_ref[...], w_ref[...],
                            preferred_element_type=jnp.float32)

    @pl.when(pl.program_id(2) == pl.num_programs(2) - 1)
    def _():
        o_ref[...] = (acc_ref[...] + b_ref[...]).astype(o_ref.dtype)


def pallas_linear(x2d, w, b, *, tm=256, tn=256, tk=512):
    """y = x2d @ w + b with x2d (M, Din), w (Din, Dout), b (Dout,).

    Used both for the fused QKV projection (w = [Wq|Wk|Wv], Dout = 3*D) and the
    output projection; one f32 accumulator, lane-dense (tn-wide) output stores.
    """
    M, Din = x2d.shape
    Dout = w.shape[1]
    tm = _pick_tile(M, tm, 8)          # sublane axis
    tn = _pick_tile(Dout, tn, 128)     # lane axis
    tk = _pick_tile(Din, tk, 128)      # lane axis of x / sublane axis of w
    grid = (M // tm, Dout // tn, Din // tk)

    isz = x2d.dtype.itemsize
    est = (2 * (tm * tk + tk * tn + tn) * isz    # double-buffered inputs
           + 2 * tm * tn * isz                   # double-buffered output
           + tm * tn * 4)                        # f32 accumulator
    return pl.pallas_call(
        _linear_kernel,
        out_shape=jax.ShapeDtypeStruct((M, Dout), x2d.dtype),
        grid=grid,
        in_specs=[
            pl.BlockSpec((tm, tk), lambda i, j, k: (i, k)),
            pl.BlockSpec((tk, tn), lambda i, j, k: (k, j)),
            pl.BlockSpec((1, tn), lambda i, j, k: (0, j)),
        ],
        out_specs=pl.BlockSpec((tm, tn), lambda i, j, k: (i, j)),
        scratch_shapes=[pltpu.VMEM((tm, tn), jnp.float32)],
        compiler_params=pltpu.CompilerParams(
            dimension_semantics=("parallel", "parallel", "arbitrary"),
            vmem_limit_bytes=_vmem_limit(est)),
    )(x2d, w, b.reshape(1, Dout))


# ------------- multi-head attention (head-batched online softmax) ---------- #

def _mha_attention(q, k, v, *, tq=512, tkv=256):
    """Flash-style attention on head-major tensors.

    q: (B, H, Sq, d_k), k/v: (B, H, Sk, d_k)  ->  (B, H, Sq, d_k).
    All heads of a group are processed per grid step with batched (leading
    head dim) einsums; the KV axis streams with an online softmax.
    """
    B, H, Sq, d_k = q.shape
    Sk = k.shape[2]
    scale = 1.0 / math.sqrt(d_k)
    tq = _pick_tile(Sq, tq, 8)
    tkv = _pick_tile(Sk, tkv, 8)

    # Expose a head-group parallel axis when the batch/seq parallel axes are too
    # small to split across v7x's 2 TensorCores.
    head_groups = 2 if (B * (Sq // tq) < 2 and H % 2 == 0) else 1
    hb = H // head_groups
    grid = (B, head_groups, Sq // tq, Sk // tkv)

    # bf16 exp halves the EUP-bound portion on v6e/v7x; keep f32 for f32 inputs.
    # TODO(synk): v5e has no bf16 EUP path; pass f32 activations there.
    use_bf16_exp = (q.dtype == jnp.bfloat16)

    def kernel(q_ref, k_ref, v_ref, o_ref, m_ref, l_ref, acc_ref):
        ki = pl.program_id(3)

        @pl.when(ki == 0)
        def _():
            m_ref[...] = jnp.full(m_ref.shape, -jnp.inf, m_ref.dtype)
            l_ref[...] = jnp.zeros_like(l_ref)
            acc_ref[...] = jnp.zeros_like(acc_ref)

        qb = q_ref[0]            # (hb, tq,  d_k)
        kb = k_ref[0]            # (hb, tkv, d_k)
        vb = v_ref[0]            # (hb, tkv, d_k)

        # Batched score matmul over all heads in the group (leading batch dim).
        s = jnp.einsum("hqd,hkd->hqk", qb, kb,
                       preferred_element_type=jnp.float32) * scale

        m_prev = m_ref[...]                                        # (hb, tq, 1)
        m_new = jnp.maximum(m_prev, jnp.max(s, axis=-1, keepdims=True))
        alpha = jnp.exp(m_prev - m_new)
        if use_bf16_exp:
            p = jnp.exp((s - m_new).astype(jnp.bfloat16))
        else:
            p = jnp.exp(s - m_new)

        # TODO(synk): the row-sum below could be moved to the MXU (p @ ones
        # column) to free the XLU slot; kept as a reduce for lowering safety.
        l_ref[...] = alpha * l_ref[...] + jnp.sum(
            p.astype(jnp.float32), axis=-1, keepdims=True)
        acc_ref[...] = alpha * acc_ref[...] + jnp.einsum(
            "hqk,hkd->hqd", p.astype(vb.dtype), vb,
            preferred_element_type=jnp.float32)
        m_ref[...] = m_new

        @pl.when(ki == pl.num_programs(3) - 1)
        def _():
            inv_l = pl.reciprocal(l_ref[...], approx=True)
            o_ref[0] = (acc_ref[...] * inv_l).astype(o_ref.dtype)

    isz = q.dtype.itemsize
    est = (2 * (hb * tq * d_k + 2 * hb * tkv * d_k + hb * tq * d_k) * isz  # dbl-buffered q,k,v,out
           + hb * tq * (d_k + 2) * 4                                       # f32 m,l,acc scratch
           + 2 * hb * tq * tkv * 4)                                        # score/p intermediates
    return pl.pallas_call(
        kernel,
        out_shape=jax.ShapeDtypeStruct((B, H, Sq, d_k), q.dtype),
        grid=grid,
        in_specs=[
            pl.BlockSpec((1, hb, tq, d_k), lambda b, g, qi, ki: (b, g, qi, 0)),
            pl.BlockSpec((1, hb, tkv, d_k), lambda b, g, qi, ki: (b, g, ki, 0)),
            pl.BlockSpec((1, hb, tkv, d_k), lambda b, g, qi, ki: (b, g, ki, 0)),
        ],
        out_specs=pl.BlockSpec((1, hb, tq, d_k), lambda b, g, qi, ki: (b, g, qi, 0)),
        scratch_shapes=[
            pltpu.VMEM((hb, tq, 1), jnp.float32),     # running max  m
            pltpu.VMEM((hb, tq, 1), jnp.float32),     # running sum  l
            pltpu.VMEM((hb, tq, d_k), jnp.float32),   # fp32 output accumulator
        ],
        compiler_params=pltpu.CompilerParams(
            dimension_semantics=("parallel", "parallel", "parallel", "arbitrary"),
            vmem_limit_bytes=_vmem_limit(est)),
    )(q, k, v)


# --------------------------------- wrappers --------------------------------- #

def fuse_qkv_params(params):
    """One-time (outside jit) concatenation of Wq|Wk|Wv into a (D, 3D) weight."""
    (wq, bq), (wk, bk), (wv, bv), (wo, bo) = params
    return (jnp.concatenate([wq, wk, wv], axis=1),
            jnp.concatenate([bq, bk, bv]),
            wo, bo)


def _split_heads(x2d, B, S, h, d_k):
    # (B*S, D) -> (B, h, S, d_k); XLA fuses the slice/reshape/transpose copies.
    return x2d.reshape(B, S, h, d_k).transpose(0, 2, 1, 3)


def multi_headed_self_attention(fused_params, x, h):
    """Self-attention forward (query = key = value = x); fused QKV projection."""
    # TODO(synk): attention mask path (mask.unsqueeze(1) + masked_fill) not wired in.
    w_qkv, b_qkv, wo, bo = fused_params
    B, S, D = x.shape
    d_k = D // h

    qkv = pallas_linear(x.reshape(B * S, D), w_qkv, b_qkv)       # (B*S, 3D), x streamed once
    q = _split_heads(qkv[:, :D], B, S, h, d_k)
    k = _split_heads(qkv[:, D:2 * D], B, S, h, d_k)
    v = _split_heads(qkv[:, 2 * D:], B, S, h, d_k)

    o = _mha_attention(q, k, v)                                  # (B, h, S, d_k)
    x2 = o.transpose(0, 2, 1, 3).reshape(B * S, D)               # merge heads
    return pallas_linear(x2, wo, bo).reshape(B, S, D)


def multi_headed_attention(params, query, key, value, h):
    """Generic forward matching MultiHeadedAttention.forward (mask=None, eval)."""
    # TODO(synk): attention mask path (mask.unsqueeze(1) + masked_fill) not wired in.
    (wq, bq), (wk, bk), (wv, bv), (wo, bo) = params
    B, Sq, D = query.shape
    Sk = key.shape[1]
    d_k = D // h

    q2 = pallas_linear(query.reshape(B * Sq, D), wq, bq)
    k2 = pallas_linear(key.reshape(B * Sk, D), wk, bk)
    v2 = pallas_linear(value.reshape(B * Sk, D), wv, bv)

    q = _split_heads(q2, B, Sq, h, d_k)
    k = _split_heads(k2, B, Sk, h, d_k)
    v = _split_heads(v2, B, Sk, h, d_k)

    o = _mha_attention(q, k, v)                                  # (B, h, Sq, d_k)
    x2 = o.transpose(0, 2, 1, 3).reshape(B * Sq, D)
    return pallas_linear(x2, wo, bo).reshape(B, Sq, D)


# -------------------------------- reference -------------------------------- #

def reference_mha(params, query, key, value, h):
    (wq, bq), (wk, bk), (wv, bv), (wo, bo) = params
    B, Sq, D = query.shape
    Sk = key.shape[1]
    d_k = D // h
    q = (query.reshape(-1, D) @ wq + bq).reshape(B, Sq, h, d_k).transpose(0, 2, 1, 3)
    k = (key.reshape(-1, D) @ wk + bk).reshape(B, Sk, h, d_k).transpose(0, 2, 1, 3)
    v = (value.reshape(-1, D) @ wv + bv).reshape(B, Sk, h, d_k).transpose(0, 2, 1, 3)
    scores = jnp.einsum("bhqd,bhkd->bhqk", q, k) / math.sqrt(d_k)
    p = jax.nn.softmax(scores, axis=-1)
    x = jnp.einsum("bhqk,bhkd->bhqd", p, v)
    x = x.transpose(0, 2, 1, 3).reshape(B * Sq, h * d_k)
    return (x @ wo + bo).reshape(B, Sq, D)


# ----------------------------------- main ----------------------------------- #

if __name__ == "__main__":
    B, S, D, H = 2, 8, 32, 4   # batch, seq, d_model, heads (d_k = 8)
    key0 = jax.random.PRNGKey(0)
    ks = jax.random.split(key0, 12)

    # weights stored as (D_in, D_out) so kernels compute x @ W + b
    # (equivalent to PyTorch's x @ weight.T + bias)
    def init_linear(kw, kb, fan_in, fan_out):
        bound = 1.0 / math.sqrt(fan_in)
        w = jax.random.uniform(kw, (fan_in, fan_out), jnp.float32, -bound, bound)
        b = jax.random.uniform(kb, (fan_out,), jnp.float32, -bound, bound)
        return (w, b)

    params = (
        init_linear(ks[0], ks[1], D, D),   # W_q
        init_linear(ks[2], ks[3], D, D),   # W_k
        init_linear(ks[4], ks[5], D, D),   # W_v
        init_linear(ks[6], ks[7], D, D),   # W_o
    )
    fused = fuse_qkv_params(params)        # one-time weight concat, outside jit

    x_in = jax.random.normal(ks[8], (B, S, D), jnp.float32)
    key_in = jax.random.normal(ks[9], (B, S, D), jnp.float32)
    value_in = jax.random.normal(ks[10], (B, S, D), jnp.float32)

    # Self-attention path (fused QKV projection, query = key = value)
    self_mha = jax.jit(multi_headed_self_attention, static_argnums=(2,))
    out_self = jax.block_until_ready(self_mha(fused, x_in, H))
    ref_self = reference_mha(params, x_in, x_in, x_in, H)
    assert out_self.shape == (B, S, D)
    assert jnp.allclose(out_self, ref_self, atol=5e-3, rtol=5e-3), \
        "self-attention mismatch vs reference"

    # Generic path (distinct query / key / value tensors)
    gen_mha = jax.jit(multi_headed_attention, static_argnums=(4,))
    out_gen = jax.block_until_ready(gen_mha(params, x_in, key_in, value_in, H))
    ref_gen = reference_mha(params, x_in, key_in, value_in, H)
    assert out_gen.shape == (B, S, D)
    assert jnp.allclose(out_gen, ref_gen, atol=5e-3, rtol=5e-3), \
        "generic attention mismatch vs reference"

    print("KERNEL_OK")
</pallas_src>

<mosaic_0001>
module attributes {stable_mosaic.version = 11 : i64} {
  func.func @_linear_kernel(%arg0: i32, %arg1: i32, %arg2: i32, %arg3: memref<16x32xf32, #tpu.memory_space<vmem>>, %arg4: memref<32x96xf32, #tpu.memory_space<vmem>>, %arg5: memref<1x96xf32, #tpu.memory_space<vmem>>, %arg6: memref<16x96xf32, #tpu.memory_space<vmem>>, %arg7: memref<16x96xf32, #tpu.memory_space<vmem>>) attributes {dimension_semantics = [#tpu.dimension_semantics<parallel>, #tpu.dimension_semantics<parallel>, #tpu.dimension_semantics<arbitrary>], iteration_bounds = array<i64: 1, 1, 1>, scalar_prefetch = 0 : i64, scratch_operands = 1 : i64, tpu.core_type = #tpu.core_type<tc>, window_params = [{transform_indices = @transform_0, window_bounds = array<i64: 16, 32>}, {transform_indices = @transform_1, window_bounds = array<i64: 32, 96>}, {transform_indices = @transform_2, window_bounds = array<i64: 1, 96>}, {transform_indices = @transform_3, window_bounds = array<i64: 16, 96>}]} {
    %c0_i32 = arith.constant 0 : i32
    %0 = arith.cmpi eq, %arg2, %c0_i32 : i32
    %1 = arith.extui %0 : i1 to i32
    %c0_i32_0 = arith.constant 0 : i32
    %2 = arith.cmpi ne, %1, %c0_i32_0 : i32
    scf.if %2 {
      %cst_10 = arith.constant 0.000000e+00 : f32
      %12 = vector.broadcast %cst_10 : f32 to vector<16x96xf32>
      %c0_11 = arith.constant 0 : index
      %c0_12 = arith.constant 0 : index
      %13 = vector.load %arg7[%c0_11, %c0_12] : memref<16x96xf32, #tpu.memory_space<vmem>>, vector<16x96xf32>
      tpu.vector_store %arg7[%c0_11, %c0_12], %12 {strides = array<i32>} : memref<16x96xf32, #tpu.memory_space<vmem>>, vector<16x96xf32>,
    } else {
    }
    %c0 = arith.constant 0 : index
    %c0_1 = arith.constant 0 : index
    %3 = vector.load %arg7[%c0, %c0_1] : memref<16x96xf32, #tpu.memory_space<vmem>>, vector<16x96xf32>
    %c0_2 = arith.constant 0 : index
    %c0_3 = arith.constant 0 : index
    %4 = vector.load %arg3[%c0_2, %c0_3] : memref<16x32xf32, #tpu.memory_space<vmem>>, vector<16x32xf32>
    %c0_4 = arith.constant 0 : index
    %c0_5 = arith.constant 0 : index
    %5 = vector.load %arg4[%c0_4, %c0_5] : memref<32x96xf32, #tpu.memory_space<vmem>>, vector<32x96xf32>
    %cst = arith.constant dense<0.000000e+00> : vector<16x96xf32>
    %6 = tpu.matmul %4, %5, %cst {dimension_numbers = #tpu.dot_dimension_numbers<[1], [0], [0], [1], [0, 0, 1, 1], [], []>} : vector<16x32xf32>, vector<32x96xf32>, vector<16x96xf32> -> vector<16x96xf32>
    %7 = arith.addf %3, %6 : vector<16x96xf32>
    %c0_6 = arith.constant 0 : index
    %c0_7 = arith.constant 0 : index
    %8 = vector.load %arg7[%c0_6, %c0_7] : memref<16x96xf32, #tpu.memory_space<vmem>>, vector<16x96xf32>
    tpu.vector_store %arg7[%c0_6, %c0_7], %7 {strides = array<i32>} : memref<16x96xf32, #tpu.memory_space<vmem>>, vector<16x96xf32>,
    %c0_i32_8 = arith.constant 0 : i32
    %9 = arith.cmpi eq, %arg2, %c0_i32_8 : i32
    %10 = arith.extui %9 : i1 to i32
    %c0_i32_9 = arith.constant 0 : i32
    %11 = arith.cmpi ne, %10, %c0_i32_9 : i32
    scf.if %11 {
      %c0_10 = arith.constant 0 : index
      %c0_11 = arith.constant 0 : index
      %12 = vector.load %arg7[%c0_10, %c0_11] : memref<16x96xf32, #tpu.memory_space<vmem>>, vector<16x96xf32>
      %c0_12 = arith.constant 0 : index
      %c0_13 = arith.constant 0 : index
      %13 = vector.load %arg5[%c0_12, %c0_13] : memref<1x96xf32, #tpu.memory_space<vmem>>, vector<1x96xf32>
      %14 = vector.broadcast %13 : vector<1x96xf32> to vector<16x96xf32>
      %15 = arith.addf %12, %14 : vector<16x96xf32>
      %c0_14 = arith.constant 0 : index
      %c0_15 = arith.constant 0 : index
      %16 = vector.load %arg6[%c0_14, %c0_15] : memref<16x96xf32, #tpu.memory_space<vmem>>, vector<16x96xf32>
      tpu.vector_store %arg6[%c0_14, %c0_15], %15 {strides = array<i32>} : memref<16x96xf32, #tpu.memory_space<vmem>>, vector<16x96xf32>,
    } else {
    }
    return
  }
  func.func @transform_0(%arg0: i32, %arg1: i32, %arg2: i32) -> (i32, i32) {
    %c0_i32 = arith.constant 0 : i32
    return %arg0, %arg2 : i32, i32
  }
  func.func @transform_1(%arg0: i32, %arg1: i32, %arg2: i32) -> (i32, i32) {
    %c0_i32 = arith.constant 0 : i32
    return %arg2, %arg1 : i32, i32
  }
  func.func @transform_2(%arg0: i32, %arg1: i32, %arg2: i32) -> (i32, i32) {
    %c0_i32 = arith.constant 0 : i32
    %c0_i32_0 = arith.constant 0 : i32
    return %c0_i32, %arg1 : i32, i32
  }
  func.func @transform_3(%arg0: i32, %arg1: i32, %arg2: i32) -> (i32, i32) {
    %c0_i32 = arith.constant 0 : i32
    return %arg0, %arg1 : i32, i32
  }
}

module attributes {stable_mosaic.version = 11 : i64} {
  func.func @kernel(%arg0: i32, %arg1: i32, %arg2: i32, %arg3: i32, %arg4: memref<1x4x8x8xf32, #tpu.memory_space<vmem>>, %arg5: memref<1x4x8x8xf32, #tpu.memory_space<vmem>>, %arg6: memref<1x4x8x8xf32, #tpu.memory_space<vmem>>, %arg7: memref<1x4x8x8xf32, #tpu.memory_space<vmem>>, %arg8: memref<4x8x1xf32, #tpu.memory_space<vmem>>, %arg9: memref<4x8x1xf32, #tpu.memory_space<vmem>>, %arg10: memref<4x8x8xf32, #tpu.memory_space<vmem>>) attributes {dimension_semantics = [#tpu.dimension_semantics<parallel>, #tpu.dimension_semantics<parallel>, #tpu.dimension_semantics<parallel>, #tpu.dimension_semantics<arbitrary>], iteration_bounds = array<i64: 2, 1, 1, 1>, scalar_prefetch = 0 : i64, scratch_operands = 3 : i64, tpu.core_type = #tpu.core_type<tc>, window_params = [{transform_indices = @transform_0, window_bounds = array<i64: 1, 4, 8, 8>}, {transform_indices = @transform_1, window_bounds = array<i64: 1, 4, 8, 8>}, {transform_indices = @transform_2, window_bounds = array<i64: 1, 4, 8, 8>}, {transform_indices = @transform_3, window_bounds = array<i64: 1, 4, 8, 8>}]} {
    %c0_i32 = arith.constant 0 : i32
    %0 = arith.cmpi eq, %arg3, %c0_i32 : i32
    %1 = arith.extui %0 : i1 to i32
    %c0_i32_0 = arith.constant 0 : i32
    %2 = arith.cmpi ne, %1, %c0_i32_0 : i32
    scf.if %2 {
      %cst_36 = arith.constant 0xFF800000 : f32
      %37 = vector.broadcast %cst_36 : f32 to vector<4x8x1xf32>
      %c0_37 = arith.constant 0 : index
      %c0_38 = arith.constant 0 : index
      %c0_39 = arith.constant 0 : index
      %38 = vector.load %arg8[%c0_37, %c0_38, %c0_39] : memref<4x8x1xf32, #tpu.memory_space<vmem>>, vector<4x8x1xf32>
      tpu.vector_store %arg8[%c0_37, %c0_38, %c0_39], %37 {strides = array<i32>} : memref<4x8x1xf32, #tpu.memory_space<vmem>>, vector<4x8x1xf32>,
      %cst_40 = arith.constant 0.000000e+00 : f32
      %39 = vector.broadcast %cst_40 : f32 to vector<4x8x1xf32>
      %c0_41 = arith.constant 0 : index
      %c0_42 = arith.constant 0 : index
      %c0_43 = arith.constant 0 : index
      %40 = vector.load %arg9[%c0_41, %c0_42, %c0_43] : memref<4x8x1xf32, #tpu.memory_space<vmem>>, vector<4x8x1xf32>
      tpu.vector_store %arg9[%c0_41, %c0_42, %c0_43], %39 {strides = array<i32>} : memref<4x8x1xf32, #tpu.memory_space<vmem>>, vector<4x8x1xf32>,
      %cst_44 = arith.constant 0.000000e+00 : f32
      %41 = vector.broadcast %cst_44 : f32 to vector<4x8x8xf32>
      %c0_45 = arith.constant 0 : index
      %c0_46 = arith.constant 0 : index
      %c0_47 = arith.constant 0 : index
      %42 = vector.load %arg10[%c0_45, %c0_46, %c0_47] : memref<4x8x8xf32, #tpu.memory_space<vmem>>, vector<4x8x8xf32>
      tpu.vector_store %arg10[%c0_45, %c0_46, %c0_47], %41 {strides = array<i32>} : memref<4x8x8xf32, #tpu.memory_space<vmem>>, vector<4x8x8xf32>,
    } else {
    }
    %c0 = arith.constant 0 : index
    %c0_1 = arith.constant 0 : index
    %c0_2 = arith.constant 0 : index
    %c0_3 = arith.constant 0 : index
    %3 = vector.load %arg4[%c0, %c0_1, %c0_2, %c0_3] : memref<1x4x8x8xf32, #tpu.memory_space<vmem>>, vector<1x4x8x8xf32>
    %4 = vector.shape_cast %3 : vector<1x4x8x8xf32> to vector<4x8x8xf32>
    %c0_4 = arith.constant 0 : index
    %c0_5 = arith.constant 0 : index
    %c0_6 = arith.constant 0 : index
    %c0_7 = arith.constant 0 : index
    %5 = vector.load %arg5[%c0_4, %c0_5, %c0_6, %c0_7] : memref<1x4x8x8xf32, #tpu.memory_space<vmem>>, vector<1x4x8x8xf32>
    %6 = vector.shape_cast %5 : vector<1x4x8x8xf32> to vector<4x8x8xf32>
    %c0_8 = arith.constant 0 : index
    %c0_9 = arith.constant 0 : index
    %c0_10 = arith.constant 0 : index
    %c0_11 = arith.constant 0 : index
    %7 = vector.load %arg6[%c0_8, %c0_9, %c0_10, %c0_11] : memref<1x4x8x8xf32, #tpu.memory_space<vmem>>, vector<1x4x8x8xf32>
    %8 = vector.shape_cast %7 : vector<1x4x8x8xf32> to vector<4x8x8xf32>
    "tpu.trace_start"() <{level = 10 : i32, message = "hqd,hkd->hqk"}> : () -> ()
    %cst = arith.constant dense<0.000000e+00> : vector<4x8x8xf32>
    %9 = tpu.matmul %4, %6, %cst {dimension_numbers = #tpu.dot_dimension_numbers<[2], [2], [1], [1], [0, 0, 0, 1, 1, 1], [0], [0]>} : vector<4x8x8xf32>, vector<4x8x8xf32>, vector<4x8x8xf32> -> vector<4x8x8xf32>
    "tpu.trace_stop"() : () -> ()
    %cst_12 = arith.constant 0.353553385 : f32
    %10 = vector.broadcast %cst_12 : f32 to vector<4x8x8xf32>
    %11 = arith.mulf %9, %10 : vector<4x8x8xf32>
    %c0_13 = arith.constant 0 : index
    %c0_14 = arith.constant 0 : index
    %c0_15 = arith.constant 0 : index
    %12 = vector.load %arg8[%c0_13, %c0_14, %c0_15] : memref<4x8x1xf32, #tpu.memory_space<vmem>>, vector<4x8x1xf32>
    %cst_16 = arith.constant dense<0xFF800000> : vector<4x8xf32>
    %13 = vector.multi_reduction <maximumf>, %11, %cst_16 [2] : vector<4x8x8xf32> to vector<4x8xf32>
    %14 = vector.shape_cast %13 : vector<4x8xf32> to vector<4x8x1xf32>
    %15 = arith.maximumf %12, %14 : vector<4x8x1xf32>
    %16 = arith.subf %12, %15 : vector<4x8x1xf32>
    %17 = math.exp %16 : vector<4x8x1xf32>
    %18 = vector.broadcast %15 : vector<4x8x1xf32> to vector<4x8x8xf32>
    %19 = arith.subf %11, %18 : vector<4x8x8xf32>
    %20 = math.exp %19 : vector<4x8x8xf32>
    %c0_17 = arith.constant 0 : index
    %c0_18 = arith.constant 0 : index
    %c0_19 = arith.constant 0 : index
    %21 = vector.load %arg9[%c0_17, %c0_18, %c0_19] : memref<4x8x1xf32, #tpu.memory_space<vmem>>, vector<4x8x1xf32>
    %22 = arith.mulf %17, %21 : vector<4x8x1xf32>
    %cst_20 = arith.constant dense<0.000000e+00> : vector<4x8xf32>
    %23 = vector.multi_reduction <add>, %20, %cst_20 [2] : vector<4x8x8xf32> to vector<4x8xf32>
    %24 = vector.shape_cast %23 : vector<4x8xf32> to vector<4x8x1xf32>
    %25 = arith.addf %22, %24 : vector<4x8x1xf32>
    %c0_21 = arith.constant 0 : index
    %c0_22 = arith.constant 0 : index
    %c0_23 = arith.constant 0 : index
    %26 = vector.load %arg9[%c0_21, %c0_22, %c0_23] : memref<4x8x1xf32, #tpu.memory_space<vmem>>, vector<4x8x1xf32>
    tpu.vector_store %arg9[%c0_21, %c0_22, %c0_23], %25 {strides = array<i32>} : memref<4x8x1xf32, #tpu.memory_space<vmem>>, vector<4x8x1xf32>,
    %c0_24 = arith.constant 0 : index
    %c0_25 = arith.constant 0 : index
    %c0_26 = arith.constant 0 : index
    %27 = vector.load %arg10[%c0_24, %c0_25, %c0_26] : memref<4x8x8xf32, #tpu.memory_space<vmem>>, vector<4x8x8xf32>
    %28 = vector.broadcast %17 : vector<4x8x1xf32> to vector<4x8x8xf32>
    %29 = arith.mulf %28, %27 : vector<4x8x8xf32>
    "tpu.trace_start"() <{level = 10 : i32, message = "hqk,hkd->hqd"}> : () -> ()
    %cst_27 = arith.constant dense<0.000000e+00> : vector<4x8x8xf32>
    %30 = tpu.matmul %20, %8, %cst_27 {dimension_numbers = #tpu.dot_dimension_numbers<[2], [1], [1], [2], [0, 0, 0, 1, 1, 2], [0], [0]>} : vector<4x8x8xf32>, vector<4x8x8xf32>, vector<4x8x8xf32> -> vector<4x8x8xf32>
    "tpu.trace_stop"() : () -> ()
    %31 = arith.addf %29, %30 : vector<4x8x8xf32>
    %c0_28 = arith.constant 0 : index
    %c0_29 = arith.constant 0 : index
    %c0_30 = arith.constant 0 : index
    %32 = vector.load %arg10[%c0_28, %c0_29, %c0_30] : memref<4x8x8xf32, #tpu.memory_space<vmem>>, vector<4x8x8xf32>
    tpu.vector_store %arg10[%c0_28, %c0_29, %c0_30], %31 {strides = array<i32>} : memref<4x8x8xf32, #tpu.memory_space<vmem>>, vector<4x8x8xf32>,
    %c0_31 = arith.constant 0 : index
    %c0_32 = arith.constant 0 : index
    %c0_33 = arith.constant 0 : index
    %33 = vector.load %arg8[%c0_31, %c0_32, %c0_33] : memref<4x8x1xf32, #tpu.memory_space<vmem>>, vector<4x8x1xf32>
    tpu.vector_store %arg8[%c0_31, %c0_32, %c0_33], %15 {strides = array<i32>} : memref<4x8x1xf32, #tpu.memory_space<vmem>>, vector<4x8x1xf32>,
    %c0_i32_34 = arith.constant 0 : i32
    %34 = arith.cmpi eq, %arg3, %c0_i32_34 : i32
    %35 = arith.extui %34 : i1 to i32
    %c0_i32_35 = arith.constant 0 : i32
    %36 = arith.cmpi ne, %35, %c0_i32_35 : i32
    scf.if %36 {
      %c0_36 = arith.constant 0 : index
      %c0_37 = arith.constant 0 : index
      %c0_38 = arith.constant 0 : index
      %37 = vector.load %arg9[%c0_36, %c0_37, %c0_38] : memref<4x8x1xf32, #tpu.memory_space<vmem>>, vector<4x8x1xf32>
      %38 = tpu.reciprocal %37 {approx = true} : vector<4x8x1xf32> -> vector<4x8x1xf32>
      %c0_39 = arith.constant 0 : index
      %c0_40 = arith.constant 0 : index
      %c0_41 = arith.constant 0 : index
      %39 = vector.load %arg10[%c0_39, %c0_40, %c0_41] : memref<4x8x8xf32, #tpu.memory_space<vmem>>, vector<4x8x8xf32>
      %40 = vector.broadcast %38 : vector<4x8x1xf32> to vector<4x8x8xf32>
      %41 = arith.mulf %39, %40 : vector<4x8x8xf32>
      %c0_42 = arith.constant 0 : index
      %c0_43 = arith.constant 0 : index
      %c0_44 = arith.constant 0 : index
      %c0_45 = arith.constant 0 : index
      %42 = vector.load %arg7[%c0_42, %c0_43, %c0_44, %c0_45] : memref<1x4x8x8xf32, #tpu.memory_space<vmem>>, vector<1x4x8x8xf32>
      %43 = vector.shape_cast %42 : vector<1x4x8x8xf32> to vector<4x8x8xf32>
      %44 = vector.shape_cast %41 : vector<4x8x8xf32> to vector<1x4x8x8xf32>
      tpu.vector_store %arg7[%c0_42, %c0_43, %c0_44, %c0_45], %44 {strides = array<i32>} : memref<1x4x8x8xf32, #tpu.memory_space<vmem>>, vector<1x4x8x8xf32>,
    } else {
    }
    return
  }
  func.func @transform_0(%arg0: i32, %arg1: i32, %arg2: i32, %arg3: i32) -> (i32, i32, i32, i32) {
    %c0_i32 = arith.constant 0 : i32
    %c0_i32_0 = arith.constant 0 : i32
    return %arg0, %arg1, %arg2, %c0_i32 : i32, i32, i32, i32
  }
  func.func @transform_1(%arg0: i32, %arg1: i32, %arg2: i32, %arg3: i32) -> (i32, i32, i32, i32) {
    %c0_i32 = arith.constant 0 : i32
    %c0_i32_0 = arith.constant 0 : i32
    return %arg0, %arg1, %arg3, %c0_i32 : i32, i32, i32, i32
  }
  func.func @transform_2(%arg0: i32, %arg1: i32, %arg2: i32, %arg3: i32) -> (i32, i32, i32, i32) {
    %c0_i32 = arith.constant 0 : i32
    %c0_i32_0 = arith.constant 0 : i32
    return %arg0, %arg1, %arg3, %c0_i32 : i32, i32, i32, i32
  }
  func.func @transform_3(%arg0: i32, %arg1: i32, %arg2: i32, %arg3: i32) -> (i32, i32, i32, i32) {
    %c0_i32 = arith.constant 0 : i32
    %c0_i32_0 = arith.constant 0 : i32
    return %arg0, %arg1, %arg2, %c0_i32 : i32, i32, i32, i32
  }
}

module attributes {stable_mosaic.version = 11 : i64} {
  func.func @_linear_kernel(%arg0: i32, %arg1: i32, %arg2: i32, %arg3: memref<16x32xf32, #tpu.memory_space<vmem>>, %arg4: memref<32x32xf32, #tpu.memory_space<vmem>>, %arg5: memref<1x32xf32, #tpu.memory_space<vmem>>, %arg6: memref<16x32xf32, #tpu.memory_space<vmem>>, %arg7: memref<16x32xf32, #tpu.memory_space<vmem>>) attributes {dimension_semantics = [#tpu.dimension_semantics<parallel>, #tpu.dimension_semantics<parallel>, #tpu.dimension_semantics<arbitrary>], iteration_bounds = array<i64: 1, 1, 1>, scalar_prefetch = 0 : i64, scratch_operands = 1 : i64, tpu.core_type = #tpu.core_type<tc>, window_params = [{transform_indices = @transform_0, window_bounds = array<i64: 16, 32>}, {transform_indices = @transform_1, window_bounds = array<i64: 32, 32>}, {transform_indices = @transform_2, window_bounds = array<i64: 1, 32>}, {transform_indices = @transform_3, window_bounds = array<i64: 16, 32>}]} {
    %c0_i32 = arith.constant 0 : i32
    %0 = arith.cmpi eq, %arg2, %c0_i32 : i32
    %1 = arith.extui %0 : i1 to i32
    %c0_i32_0 = arith.constant 0 : i32
    %2 = arith.cmpi ne, %1, %c0_i32_0 : i32
    scf.if %2 {
      %cst_10 = arith.constant 0.000000e+00 : f32
      %12 = vector.broadcast %cst_10 : f32 to vector<16x32xf32>
      %c0_11 = arith.constant 0 : index
      %c0_12 = arith.constant 0 : index
      %13 = vector.load %arg7[%c0_11, %c0_12] : memref<16x32xf32, #tpu.memory_space<vmem>>, vector<16x32xf32>
      tpu.vector_store %arg7[%c0_11, %c0_12], %12 {strides = array<i32>} : memref<16x32xf32, #tpu.memory_space<vmem>>, vector<16x32xf32>,
    } else {
    }
    %c0 = arith.constant 0 : index
    %c0_1 = arith.constant 0 : index
    %3 = vector.load %arg7[%c0, %c0_1] : memref<16x32xf32, #tpu.memory_space<vmem>>, vector<16x32xf32>
    %c0_2 = arith.constant 0 : index
    %c0_3 = arith.constant 0 : index
    %4 = vector.load %arg3[%c0_2, %c0_3] : memref<16x32xf32, #tpu.memory_space<vmem>>, vector<16x32xf32>
    %c0_4 = arith.constant 0 : index
    %c0_5 = arith.constant 0 : index
    %5 = vector.load %arg4[%c0_4, %c0_5] : memref<32x32xf32, #tpu.memory_space<vmem>>, vector<32x32xf32>
    %cst = arith.constant dense<0.000000e+00> : vector<16x32xf32>
    %6 = tpu.matmul %4, %5, %cst {dimension_numbers = #tpu.dot_dimension_numbers<[1], [0], [0], [1], [0, 0, 1, 1], [], []>} : vector<16x32xf32>, vector<32x32xf32>, vector<16x32xf32> -> vector<16x32xf32>
    %7 = arith.addf %3, %6 : vector<16x32xf32>
    %c0_6 = arith.constant 0 : index
    %c0_7 = arith.constant 0 : index
    %8 = vector.load %arg7[%c0_6, %c0_7] : memref<16x32xf32, #tpu.memory_space<vmem>>, vector<16x32xf32>
    tpu.vector_store %arg7[%c0_6, %c0_7], %7 {strides = array<i32>} : memref<16x32xf32, #tpu.memory_space<vmem>>, vector<16x32xf32>,
    %c0_i32_8 = arith.constant 0 : i32
    %9 = arith.cmpi eq, %arg2, %c0_i32_8 : i32
    %10 = arith.extui %9 : i1 to i32
    %c0_i32_9 = arith.constant 0 : i32
    %11 = arith.cmpi ne, %10, %c0_i32_9 : i32
    scf.if %11 {
      %c0_10 = arith.constant 0 : index
      %c0_11 = arith.constant 0 : index
      %12 = vector.load %arg7[%c0_10, %c0_11] : memref<16x32xf32, #tpu.memory_space<vmem>>, vector<16x32xf32>
      %c0_12 = arith.constant 0 : index
      %c0_13 = arith.constant 0 : index
      %13 = vector.load %arg5[%c0_12, %c0_13] : memref<1x32xf32, #tpu.memory_space<vmem>>, vector<1x32xf32>
      %14 = vector.broadcast %13 : vector<1x32xf32> to vector<16x32xf32>
      %15 = arith.addf %12, %14 : vector<16x32xf32>
      %c0_14 = arith.constant 0 : index
      %c0_15 = arith.constant 0 : index
      %16 = vector.load %arg6[%c0_14, %c0_15] : memref<16x32xf32, #tpu.memory_space<vmem>>, vector<16x32xf32>
      tpu.vector_store %arg6[%c0_14, %c0_15], %15 {strides = array<i32>} : memref<16x32xf32, #tpu.memory_space<vmem>>, vector<16x32xf32>,
    } else {
    }
    return
  }
  func.func @transform_0(%arg0: i32, %arg1: i32, %arg2: i32) -> (i32, i32) {
    %c0_i32 = arith.constant 0 : i32
    return %arg0, %arg2 : i32, i32
  }
  func.func @transform_1(%arg0: i32, %arg1: i32, %arg2: i32) -> (i32, i32) {
    %c0_i32 = arith.constant 0 : i32
    return %arg2, %arg1 : i32, i32
  }
  func.func @transform_2(%arg0: i32, %arg1: i32, %arg2: i32) -> (i32, i32) {
    %c0_i32 = arith.constant 0 : i32
    %c0_i32_0 = arith.constant 0 : i32
    return %c0_i32, %arg1 : i32, i32
  }
  func.func @transform_3(%arg0: i32, %arg1: i32, %arg2: i32) -> (i32, i32) {
    %c0_i32 = arith.constant 0 : i32
    return %arg0, %arg1 : i32, i32
  }
}

</mosaic_0001>

<bundles_post_ra>
// kernel: multi_headed_self_attention.3
= control target key start
LH: loop header
LB: loop body
LE: loop exit
PB: predicated region body
PF: predicated region fallthrough
CT: control target
= control target key end

     0   :  { %8 = vsyncpa [#allocation4], 0  ;;  %s207_s12 = smov [#allocation3]   ;;  %s264_s0 = inlined_call_operand.vmem [shape: f32[16,32], index: 0, kind: input, shape index: {}]   ;;  %s265_s1 = inlined_call_operand.hbm [shape: f32[32,96], index: 1, kind: input, shape index: {}]   ;;  %s266_s2 = inlined_call_operand.vmem [shape: f32[1,96], index: 2, kind: input, shape index: {}]   ;;  %s267_s3 = inlined_call_operand.vmem [shape: f32[16,96], index: 3, kind: output, shape index: {}]  }
   0x1   :  { %s16_s13 = sshll.u32 %s207_s12, 4  ;;  %s183_s16 = scalar_lea.hbm %s265_s1, 512  ;;  %s17_s13 = int_to_ptr.vmem [resolvable:$true] %s16_s13 }
   0x2   :  { %p184_p0 = scmp.ne.s32.totalorder %s265_s1, %s183_s16  ;;  %p187_p1 = scmp.lt.u32.totalorder %s183_s16, %s265_s1 }
   0x4   :  { %p189_p2 = pnand %p187_p1, %p184_p0 }
   0x6   :  { %192 = shalt.err (!%p189_p2)
}
   0x7   :  { %s193_s21 = scalar_lea.vmem %s17_s13, 512  ;;  %p198_p4 = scmp.lt.s32.totalorder %s17_s13, %s17_s13 }
   0x8   :  { %p194_p3 = scmp.ne.s32.totalorder %s17_s13, %s193_s21  ;;  %p199_p5 = scmp.lt.s32.totalorder %s193_s21, %s193_s21 }
   0xa   :  { %p200_p6 = por %p199_p5, %p198_p4 }
   0xc   :  { %p201_p7 = pnand %p200_p6, %p194_p3 }
   0xe   :  { %204 = shalt.err (!%p201_p7)
}
   0xf   :  { %s208_s22 = smov 128   ;;  %s209_s23 = smov 8  }
  0x10   :  { %22 = dma.hbm_to_vmem [thread:$0]  %s265_s1, 512, %s17_s13, [#allocation4], %s208_s22, %s208_s22, %s209_s23  }
  0x11   :  { %205 = dma.done.wait [#allocation4], 512  }
  0x12   :  { %206 = vsyncadd [#allocation4], 4294966784  ;;  %vm32_vm0 = vcmask 785408   ;;  %v210_v0 = vmov 0.0   ;;  %vm43_vm1 = vcmask 261120   ;;  %v39_v1 = vld [vmem:[#allocation3] sm:$0xff] }
  0x13   :  { %34 = vst.msk [vmem:[#allocation2 + $0x8] sm:$0xff] %vm32_vm0, %v210_v0  ;;  %33 = vst.msk [vmem:[#allocation2] sm:$0xff] %vm32_vm0, %v210_v0  ;;  %v40_v2 = vld [vmem:[#allocation3 + $0x8] sm:$0xff]  ;;  %v41_v3 = vld [vmem:[#allocation3 + $0x10] sm:$0xff] }
  0x14   :  { %v171_v4 = vpack.c.bf16 %v40_v2, %v39_v1  ;;  %v42_v5 = vld [vmem:[#allocation3 + $0x18] sm:$0xff]  ;;  %v37_v6 = vld [vmem:[%s264_s0] sm:$0xff] }
  0x15   :  { %v175_v7 = vpack.c.bf16 %v42_v5, %v41_v3  ;;  %168 = vmatprep.mubr.msk.f32.mxu0 %vm43_vm1, %v37_v6  ;;  %v38_v8 = vld [vmem:[%s264_s0 + $0x8] sm:$0xff]  ;;  %v153_v15 = vld [vmem:[%s266_s2] ss:$0 sm:$0xff] }
  0x16   :  { %172 = vmatprep.subr.bf16.mxu0 %v171_v4 }
  0x17   :  { %174 = vmatpush3.bf16.msra.mxu0 %v171_v4 }
  0x18   :  { %176 = vmatprep.subr.bf16.mxu0 %v175_v7 }
  0x1a   :  { %v36_v9 = vld [vmem:[#allocation2 + $0x8] sm:$0xff]  ;;  %v35_v10 = vld [vmem:[#allocation2] sm:$0xff] }
  0x1b   :  { %178 = vmatpush3.bf16.msra.mxu0 %v175_v7 }
  0x1e   :  { %169 = vmatmul.mubr.msk.f32.vlgmr.msra.gmra.mrb[0].mxu0 %vm43_vm1, %v38_v8 }
  0xf1   :  { %v170_v11 = vpop.f32.mrb[0].mxu0 }
  0xf2   :  { %v126_v12 = vadd.f32 %v170_v11, %v36_v9  ;;  %v116_v13 = vpop.f32.mrb[1].mxu0 }
  0xf3   :  { %v125_v14 = vadd.f32 %v116_v13, %v35_v10 }
  0xf4   :  { %129 = vst.msk [vmem:[#allocation2 + $0x8] sm:$0xff] %vm32_vm0, %v126_v12 }
  0xf5   :  { %128 = vst.msk [vmem:[#allocation2] sm:$0xff] %vm32_vm0, %v125_v14 }
  0xfb   :  { %v134_v16 = vld [vmem:[#allocation2 + $0x8] sm:$0xff] }
  0xfc   :  { %v143_v17 = vadd.f32 %v153_v15, %v134_v16  ;;  %v133_v18 = vld [vmem:[#allocation2] sm:$0xff] }
  0xfd   :  { %v142_v19 = vadd.f32 %v153_v15, %v133_v18 }
  0xfe   :  { %145 = vst.msk [vmem:[%s267_s3 + $0x8] sm:$0xff] %vm32_vm0, %v143_v17 }
  0xff   :  { %144 = vst.msk [vmem:[%s267_s3] sm:$0xff] %vm32_vm0, %v142_v19 }
 0x100   :  { %150 = vsyncpa [#allocation4], 1 }

// kernel: multi_headed_self_attention.5
= control target key start
LH: loop header
LB: loop body
LE: loop exit
PB: predicated region body
PF: predicated region fallthrough
CT: control target
= control target key end

     0   :  { %vm19_vm0 = vcmask 261120   ;;  %v204_v6 = vmov 0.0   ;;  %s269_s0 = inlined_call_operand.vmem [shape: f32[16,32], index: 0, kind: input, shape index: {}]   ;;  %s270_s1 = inlined_call_operand.vmem [shape: f32[32,32], index: 1, kind: input, shape index: {}]   ;;  %s271_s2 = inlined_call_operand.vmem [shape: f32[1,32], index: 2, kind: input, shape index: {}]   ;;  %s272_s3 = inlined_call_operand.hbm [shape: f32[16,32], index: 3, kind: output, shape index: {}]  }
   0x1   :  { %v26_v0 = vld [vmem:[%s270_s1] sm:$0xff]  ;;  %v27_v1 = vld [vmem:[%s270_s1 + $0x8] sm:$0xff]  ;;  %v28_v2 = vld [vmem:[%s270_s1 + $0x10] sm:$0xff]  ;;  %21 = vst.msk [vmem:[#allocation2 + $0x8] sm:$0xff] %vm19_vm0, %v204_v6 }
   0x2   :  { %v168_v3 = vpack.c.bf16 %v27_v1, %v26_v0  ;;  %v29_v4 = vld [vmem:[%s270_s1 + $0x18] sm:$0xff]  ;;  %v24_v5 = vld [vmem:[%s269_s0] sm:$0xff]  ;;  %20 = vst.msk [vmem:[#allocation2] sm:$0xff] %vm19_vm0, %v204_v6 }
   0x3   :  { %v172_v7 = vpack.c.bf16 %v29_v4, %v28_v2  ;;  %165 = vmatprep.mubr.msk.f32.mxu0 %vm19_vm0, %v24_v5 }
   0x4   :  { %8 = vsyncpa [#allocation4], 0  ;;  %169 = vmatprep.subr.bf16.mxu0 %v168_v3  ;;  %v25_v8 = vld [vmem:[%s269_s0 + $0x8] sm:$0xff]  ;;  %v150_v15 = vld [vmem:[%s271_s2] ss:$0 sm:$0xff]  ;;  %s205_s25 = smov [#allocation3]  }
   0x5   :  { %171 = vmatpush3.bf16.msra.mxu0 %v168_v3  ;;  %s137_s26 = sshll.u32 %s205_s25, 4  ;;  %s138_s26 = int_to_ptr.vmem [resolvable:$true] %s137_s26 }
   0x6   :  { %173 = vmatprep.subr.bf16.mxu0 %v172_v7  ;;  %s180_s0 = scalar_lea.vmem %s138_s26, 256  ;;  %p185_p1 = scmp.lt.s32.totalorder %s138_s26, %s138_s26 }
   0x7   :  { %p181_p0 = scmp.ne.s32.totalorder %s138_s26, %s180_s0  ;;  %p186_p2 = scmp.lt.s32.totalorder %s180_s0, %s180_s0 }
   0x8   :  { %v23_v9 = vld [vmem:[#allocation2 + $0x8] sm:$0xff] }
   0x9   :  { %175 = vmatpush3.bf16.msra.mxu0 %v172_v7  ;;  %v22_v10 = vld [vmem:[#allocation2] sm:$0xff]  ;;  %p187_p3 = por %p186_p2, %p185_p1 }
   0xb   :  { %p188_p4 = pnand %p187_p3, %p181_p0 }
   0xc   :  { %166 = vmatmul.mubr.msk.f32.vlgmr.msra.gmra.mrb[0].mxu0 %vm19_vm0, %v25_v8 }
  0xdf   :  { %v167_v11 = vpop.f32.mrb[0].mxu0 }
  0xe0   :  { %v113_v12 = vadd.f32 %v167_v11, %v23_v9  ;;  %v103_v13 = vpop.f32.mrb[1].mxu0 }
  0xe1   :  { %v112_v14 = vadd.f32 %v103_v13, %v22_v10 }
  0xe2   :  { %115 = vst.msk [vmem:[#allocation2 + $0x8] sm:$0xff] %vm19_vm0, %v113_v12 }
  0xe3   :  { %114 = vst.msk [vmem:[#allocation2] sm:$0xff] %vm19_vm0, %v112_v14 }
  0xe9   :  { %v120_v16 = vld [vmem:[#allocation2 + $0x8] sm:$0xff] }
  0xea   :  { %v119_v17 = vld [vmem:[#allocation2] sm:$0xff]  ;;  %v129_v18 = vadd.f32 %v150_v15, %v120_v16 }
  0xeb   :  { %v128_v19 = vadd.f32 %v150_v15, %v119_v17 }
  0xec   :  { %131 = vst.msk [vmem:[#allocation3 + $0x8] sm:$0xff] %vm19_vm0, %v129_v18 }
  0xed   :  { %130 = vst.msk [vmem:[#allocation3] sm:$0xff] %vm19_vm0, %v128_v19 }
  0xee   :  { %191 = shalt.err (!%p188_p4)
}
  0xef   :  { %s192_s28 = scalar_lea.hbm %s272_s3, 256 }
  0xf0   :  { %p193_p5 = scmp.ne.s32.totalorder %s272_s3, %s192_s28  ;;  %p196_p6 = scmp.lt.u32.totalorder %s192_s28, %s272_s3 }
  0xf2   :  { %p198_p7 = pnand %p196_p6, %p193_p5 }
  0xf4   :  { %201 = shalt.err (!%p198_p7)
}
  0xf5   :  { %s206_s6 = smov 128   ;;  %s207_s7 = smov 8  }
  0xf6   :  { %143 = dma.vmem_to_hbm [thread:$0]  %s138_s26, 256, %s272_s3, [#allocation4], %s206_s6, %s206_s6, %s207_s7  }
  0xf7   :  { %202 = dma.done.wait [#allocation4], 256  }
  0xf8   :  { %203 = vsyncadd [#allocation4], 4294967040 }
  0xf9   :  { %147 = vsyncpa [#allocation4], 1 }

// kernel: multi_headed_self_attention.4
= control target key start
LH: loop header
LB: loop body
LE: loop exit
PB: predicated region body
PF: predicated region fallthrough
CT: control target
= control target key end

     0   :  { %s1481_s12 = smov 0   ;;  %s1483_s13 = smov 0   ;;  %s1630_s0 = inlined_call_operand.vmem [shape: f32[2,4,8,8], index: 0, kind: input, shape index: {}]   ;;  %s1631_s1 = inlined_call_operand.vmem [shape: f32[2,4,8,8], index: 1, kind: input, shape index: {}]   ;;  %s1632_s2 = inlined_call_operand.vmem [shape: f32[2,4,8,8], index: 2, kind: input, shape index: {}]   ;;  %s1633_s3 = inlined_call_operand.vmem [shape: f32[2,4,8,8], index: 3, kind: output, shape index: {}]  }
   0x1   :  { %s1485_s14 = smov 0  }
   0x2 LB: > { %s39_s15 = sadd.s32 1, %s1451_s13  ;;  %p1296_p0 = scmp.ge.s32.totalorder %s1455_s14, 1  ;;  %s1455_s14 = sphi %s1485_s14, %s13_s14   ;;  %s1451_s13 = sphi %s1483_s13, %s1635_s13   ;;  %s1447_s12 = sphi %s1481_s12, %s1634_s12  }
   0x3   : > { %p41_p1 = scmp.ge.s32.totalorder %s39_s15, 2  ;;  %p223_p2 = scmp.lt.s32.totalorder %s1455_s14, 3 }
   0x5   : > { %s1637_s15 = smov (%p41_p1, %s39_s15), 0  ;;  %p224_p3 = pnand %p1296_p0, %p223_p2 }
   0x6   : > { %p286_p4 = scmp.lt.s32.totalorder (!%p224_p3), %s1447_s12, 1  ;;  %vm350_vm0 = vcmask (!%p224_p3), 64512   ;;  %v1457_v0 = vmov (!%p224_p3), 0.0   ;;  %vm1458_vm1 = vmmov (!%p224_p3), 0   ;;  %vm341_vm2 = vcmask (!%p224_p3), 7168  }
   0x7   : > { %227 = sbr.rel (%p224_p3) target bundleno = 830 (0x33e), region = 32  ;;  %1339 = vmatprep.subr.mxu0 (!%p224_p3), %v1457_v0  ;;  %351 = vst.msk [vmem:[#allocation4] sm:$0xff] (!%p224_p3), %vm350_vm0, %v1457_v0  ;;  %352 = vst.msk [vmem:[#allocation4 + $0x8] sm:$0xff] (!%p224_p3), %vm350_vm0, %v1457_v0  ;;  %1341 = vmatprep.mubr.msk.f32.mxu0 (!%p224_p3), %vm1458_vm1, %v1457_v0  ;;  %v1459_v9 = vmov (!%p224_p3), -inf   ;;  %v1460_v26 = vmov (!%p224_p3), 0  }
   0x8   : > { %353 = vst.msk [vmem:[#allocation4 + $0x10] sm:$0xff] (!%p224_p3), %vm350_vm0, %v1457_v0  ;;  %354 = vst.msk [vmem:[#allocation4 + $0x18] sm:$0xff] (!%p224_p3), %vm350_vm0, %v1457_v0  ;;  %1344 = vmatprep.subr.mxu1 (!%p224_p3), %v1457_v0  ;;  %1346 = vmatprep.mubr.msk.f32.mxu1 (!%p224_p3), %vm1458_vm1, %v1457_v0 }
   0x9   : > { %342 = vst.msk [vmem:[#allocation2] sm:$0xff] (!%p224_p3), %vm341_vm2, %v1459_v9  ;;  %343 = vst.msk [vmem:[#allocation2 + $0x8] sm:$0xff] (!%p224_p3), %vm341_vm2, %v1459_v9  ;;  %1407 = vset.pattern.permute.xlu0 (!%p224_p3), %v1460_v26  ;;  %1408 = vset.pattern.permute.xlu1 (!%p224_p3), %v1460_v26 }
   0xa   : > { %344 = vst.msk [vmem:[#allocation2 + $0x10] sm:$0xff] (!%p224_p3), %vm341_vm2, %v1459_v9  ;;  %345 = vst.msk [vmem:[#allocation2 + $0x18] sm:$0xff] (!%p224_p3), %vm341_vm2, %v1459_v9 }
   0xb   : > { %346 = vst.msk [vmem:[#allocation3] sm:$0xff] (!%p224_p3), %vm341_vm2, %v1457_v0  ;;  %347 = vst.msk [vmem:[#allocation3 + $0x8] sm:$0xff] (!%p224_p3), %vm341_vm2, %v1457_v0 }
   0xc   : > { %348 = vst.msk [vmem:[#allocation3 + $0x10] sm:$0xff] (!%p224_p3), %vm341_vm2, %v1457_v0  ;;  %349 = vst.msk [vmem:[#allocation3 + $0x18] sm:$0xff] (!%p224_p3), %vm341_vm2, %v1457_v0 }
   0xe   : > { %s1639_s12 = smov (!%p286_p4, %s1447_s12), 1 }
   0xf   : > { %s1513_s16 = sshll.u32 %s1639_s12, 5 }
  0x10   : > { %s309_s19 = scalar_lea.vmem %s1631_s1, %s1513_s16  ;;  %s296_s22 = scalar_lea.vmem %s1630_s0, %s1513_s16  ;;  %v1559_v27 = vld [vmem:[#allocation2] sm:$0xff]  ;;  %v1564_v30 = vld [vmem:[#allocation2 + $0x8] sm:$0xff] }
  0x11   : > { %v359_v1 = vld [vmem:[%s309_s19] sm:$0xff]  ;;  %v360_v2 = vld [vmem:[%s309_s19 + $0x8] sm:$0xff]  ;;  %v361_v5 = vld [vmem:[%s309_s19 + $0x10] sm:$0xff]  ;;  %s322_s25 = scalar_lea.vmem %s1632_s2, %s1513_s16  ;;  %s335_s28 = scalar_lea.vmem %s1633_s3, %s1513_s16 }
  0x12   : > { %1340 = vmatpush3.xpose.msk.msra.mxu0 %vm350_vm0, %v359_v1  ;;  %v355_v3 = vld [vmem:[%s296_s22] sm:$0xff]  ;;  %1345 = vmatpush3.xpose.msk.msra.mxu1 %vm350_vm0, %v360_v2  ;;  %v356_v4 = vld [vmem:[%s296_s22 + $0x8] sm:$0xff]  ;;  %v362_v6 = vld [vmem:[%s309_s19 + $0x18] sm:$0xff] }
  0x13   : > { %1349 = vmatprep.subr.mxu0 %v1457_v0  ;;  %1354 = vmatprep.subr.mxu1 %v1457_v0  ;;  %v357_v7 = vld [vmem:[%s296_s22 + $0x10] sm:$0xff]  ;;  %v358_v8 = vld [vmem:[%s296_s22 + $0x18] sm:$0xff]  ;;  %v363_v43 = vld [vmem:[%s322_s25] sm:$0xff] }
  0x14   : > { %v1566_v31 = vld [vmem:[#allocation2 + $0x10] sm:$0xff]  ;;  %v1575_v37 = vld [vmem:[#allocation2 + $0x18] sm:$0xff]  ;;  %v364_v44 = vld [vmem:[%s322_s25 + $0x8] sm:$0xff] }
  0x15   : > { %1342 = vmatmul.mubr.msk.f32.vlgmr.msra.gmra.mrb[0].mxu0 %vm350_vm0, %v355_v3  ;;  %1347 = vmatmul.mubr.msk.f32.vlgmr.msra.gmra.mrb[0].mxu1 %vm350_vm0, %v356_v4  ;;  %v365_v56 = vld [vmem:[%s322_s25 + $0x10] sm:$0xff]  ;;  %v366_v60 = vld [vmem:[%s322_s25 + $0x18] sm:$0xff] }
  0x16   : > { %1350 = vmatpush3.xpose.msk.msra.mxu0 %vm350_vm0, %v361_v5  ;;  %1351 = vmatprep.mubr.msk.f32.mxu0 %vm1458_vm1, %v1457_v0 }
  0x17   : > { %1355 = vmatpush3.xpose.msk.msra.mxu1 %vm350_vm0, %v362_v6  ;;  %1356 = vmatprep.mubr.msk.f32.mxu1 %vm1458_vm1, %v1457_v0 }
  0x18   : > { %1359 = vmatprep.subr.mxu0 %v1457_v0  ;;  %1364 = vmatprep.subr.mxu1 %v1457_v0 }
  0x19   : > { %1352 = vmatmul.mubr.msk.f32.vlgmr.msra.gmra.mrb[2].mxu0 %vm350_vm0, %v357_v7 }
  0x1a   : > { %1357 = vmatmul.mubr.msk.f32.vlgmr.msra.gmra.mrb[2].mxu1 %vm350_vm0, %v358_v8  ;;  %1361 = vmatprep.mubr.msk.f32.mxu0 %vm1458_vm1, %v1457_v0 }
  0x1b   : > { %1366 = vmatprep.mubr.msk.f32.mxu1 %vm1458_vm1, %v1457_v0  ;;  %1360 = vmatpush3.msra.mxu0 %v363_v43 }
  0x1c   : > { %1369 = vmatprep.subr.mxu0 %v1457_v0  ;;  %1365 = vmatpush3.msra.mxu1 %v364_v44 }
  0x1d   : > { %1374 = vmatprep.subr.mxu1 %v1457_v0 }
  0xe8   : > { %v440_v10 = vpop.f32.mrb[0].mxu0  ;;  %v516_v11 = vpop.f32.mrb[0].mxu1 }
  0xe9   : > { %v672_v12 = vmul.f32 0.35355338, %v440_v10  ;;  %v1343_v13 = vpop.f32.mrb[1].mxu0  ;;  %v673_v14 = vmul.f32 0.35355338, %v516_v11  ;;  %v1348_v15 = vpop.f32.mrb[1].mxu1 }
  0xea   : > { %v740_v11 = vld [vmem:[#allocation3] sm:$0xff] }
  0xeb   : > { %v680_v16 = vsel %vm350_vm0, %v672_v12, -inf  ;;  %v683_v19 = vsel %vm350_vm0, %v673_v14, -inf }
  0xec   : > { %681 = vmax.xlane.f32.xlu0 %v680_v16  ;;  %v592_v17 = vpop.f32.mrb[2].mxu0 }
  0xed   : > { %v674_v18 = vmul.f32 0.35355338, %v592_v17  ;;  %v1353_v20 = vpop.f32.mrb[3].mxu0  ;;  %v668_v21 = vpop.f32.mrb[2].mxu1 }
  0xee   : > { %v675_v22 = vmul.f32 0.35355338, %v668_v21  ;;  %v1358_v23 = vpop.f32.mrb[3].mxu1 }
  0xef   : > { %v686_v24 = vsel %vm350_vm0, %v674_v18, -inf }
  0xf0   : > { %684 = vmax.xlane.f32.xlu0 %v683_v19  ;;  %687 = vmax.xlane.f32.xlu1 %v686_v24  ;;  %v689_v25 = vsel %vm350_vm0, %v675_v22, -inf }
  0xf4   : > { %690 = vmax.xlane.f32.xlu1 %v689_v25 }
 0x179   : > { %v682_v28 = vpop.xlane.xlu0 %681 }
 0x17a   : > { %v1562_v29 = vmax.f32 %v1559_v27, %v682_v28 }
 0x17c   : > { %v696_v32 = vsub.f32 %v1559_v27, %v1562_v29  ;;  %1097 = vst.msk [vmem:[#allocation2] sm:$0xff] %vm341_vm2, %v1562_v29  ;;  %710 = vperm.xlu0 %1407, %v1562_v29  }
 0x17d   : > { %v685_v33 = vpop.xlane.xlu0 %684  ;;  %v688_v34 = vpop.xlane.xlu1 %687 }
 0x17e   : > { %v693_v35 = vmax.f32 %v1564_v30, %v685_v33  ;;  %v694_v36 = vmax.f32 %v1566_v31, %v688_v34  ;;  %v700_v5 = vmul.f32 1.442695, %v696_v32 }
 0x180   : > { %v697_v38 = vsub.f32 %v1564_v30, %v693_v35  ;;  %1098 = vst.msk [vmem:[#allocation2 + $0x8] sm:$0xff] %vm341_vm2, %v693_v35  ;;  %715 = vperm.xlu1 %1408, %v693_v35   ;;  %v698_v39 = vsub.f32 %v1566_v31, %v694_v36  ;;  %1099 = vst.msk [vmem:[#allocation2 + $0x10] sm:$0xff] %vm341_vm2, %v694_v36  ;;  %v769_v35 = vld [vmem:[#allocation4] sm:$0xff] }
 0x181   : > { %v691_v40 = vpop.xlane.xlu1 %690 }
 0x182   : > { %v695_v41 = vmax.f32 %v1575_v37, %v691_v40  ;;  %v702_v3 = vmul.f32 1.442695, %v697_v38  ;;  %v770_v38 = vld [vmem:[#allocation4 + $0x8] sm:$0xff] }
 0x184   : > { %720 = vperm.xlu1 %1408, %v694_v36   ;;  %v699_v42 = vsub.f32 %v1575_v37, %v695_v41  ;;  %1100 = vst.msk [vmem:[#allocation2 + $0x18] sm:$0xff] %vm341_vm2, %v695_v41 }
 0x186   : > { %v706_v6 = vmul.f32 1.442695, %v699_v42 }
 0x188   : > { %725 = vperm.xlu1 %1408, %v695_v41  }
 0x1fb   : > { %v711_v45 = vpop.permute.xlu0 %710 }
 0x1fc   : > { %v728_v46 = vsub.f32 %v672_v12, %v711_v45  ;;  %v771_v45 = vld [vmem:[#allocation4 + $0x10] sm:$0xff] }
 0x1fe   : > { %v732_v47 = vmul.f32 1.442695, %v728_v46 }
 0x1ff   : > { %v716_v48 = vpop.permute.xlu1 %715 }
 0x200   : > { %1409 = vpow2.f32 %v732_v47  ;;  %v729_v49 = vsub.f32 %v673_v14, %v716_v48  ;;  %v741_v14 = vld [vmem:[#allocation3 + $0x8] sm:$0xff] }
 0x202   : > { %v734_v50 = vmul.f32 1.442695, %v729_v49 }
 0x203   : > { %v721_v51 = vpop.permute.xlu1 %720 }
 0x204   : > { %1411 = vpow2.f32 %v734_v50  ;;  %v730_v52 = vsub.f32 %v674_v18, %v721_v51  ;;  %v742_v18 = vld [vmem:[#allocation3 + $0x10] sm:$0xff]  ;;  %v772_v50 = vld [vmem:[#allocation4 + $0x18] sm:$0xff] }
 0x206   : > { %v736_v53 = vmul.f32 1.442695, %v730_v52 }
 0x207   : > { %v726_v54 = vpop.permute.xlu1 %725 }
 0x208   : > { %1413 = vpow2.f32 %v736_v53  ;;  %v731_v55 = vsub.f32 %v675_v22, %v726_v54  ;;  %v743_v22 = vld [vmem:[#allocation3 + $0x18] sm:$0xff] }
 0x20a   : > { %v1410_v57 = vpop.eup %1409  ;;  %v738_v58 = vmul.f32 1.442695, %v731_v55 }
 0x20b   : > { %1362 = vmatmul.mubr.msk.f32.vlgmr.msra.gmra.mrb[4].mxu0 %vm350_vm0, %v1410_v57  ;;  %v748_v59 = vsel %vm350_vm0, %v1410_v57, 0.0 }
 0x20c   : > { %1415 = vpow2.f32 %v738_v58  ;;  %749 = vadd.xlane.f32.xlu1 %v748_v59  ;;  %1370 = vmatpush3.msra.mxu0 %v365_v56 }
 0x20d   : > { %1371 = vmatprep.mubr.msk.f32.mxu0 %vm1458_vm1, %v1457_v0  ;;  %1417 = vpow2.f32 %v702_v3 }
 0x20e   : > { %v1412_v61 = vpop.eup %1411  ;;  %1419 = vpow2.f32 %v700_v5 }
 0x20f   : > { %1367 = vmatmul.mubr.msk.f32.vlgmr.msra.gmra.mrb[4].mxu1 %vm350_vm0, %v1412_v61  ;;  %v751_v62 = vsel %vm350_vm0, %v1412_v61, 0.0 }
 0x210   : > { %752 = vadd.xlane.f32.xlu0 %v751_v62  ;;  %1375 = vmatpush3.msra.mxu1 %v366_v60 }
 0x211   : > { %1376 = vmatprep.mubr.msk.f32.mxu1 %vm1458_vm1, %v1457_v0  ;;  %v704_v0 = vmul.f32 1.442695, %v698_v39 }
 0x212   : > { %v1414_v63 = vpop.eup %1413 }
 0x213   : > { %1372 = vmatmul.mubr.msk.f32.vlgmr.msra.gmra.mrb[6].mxu0 %vm350_vm0, %v1414_v63  ;;  %v754_v1 = vsel %vm350_vm0, %v1414_v63, 0.0  ;;  %1421 = vpow2.f32 %v704_v0 }
 0x214   : > { %755 = vadd.xlane.f32.xlu1 %v754_v1  ;;  %1423 = vpow2.f32 %v706_v6 }
 0x216   : > { %v1416_v2 = vpop.eup %1415 }
 0x217   : > { %1377 = vmatmul.mubr.msk.f32.vlgmr.msra.gmra.mrb[6].mxu1 %vm350_vm0, %v1416_v2  ;;  %v757_v4 = vsel %vm350_vm0, %v1416_v2, 0.0  ;;  %v1418_v7 = vpop.eup %1417 }
 0x218   : > { %758 = vadd.xlane.f32.xlu1 %v757_v4  ;;  %v1420_v8 = vpop.eup %1419  ;;  %v745_v16 = vmul.f32 %v1418_v7, %v741_v14 }
 0x219   : > { %v744_v12 = vmul.f32 %v1420_v8, %v740_v11 }
 0x21d   : > { %v1422_v9 = vpop.eup %1421 }
 0x21e   : > { %v1424_v10 = vpop.eup %1423  ;;  %v746_v20 = vmul.f32 %v1422_v9, %v742_v18 }
 0x21f   : > { %v747_v25 = vmul.f32 %v1424_v10, %v743_v22 }
 0x226   : > { %780 = vperm.xlu0 %1407, %v1418_v7  }
 0x229   : > { %775 = vperm.xlu1 %1408, %v1420_v8  }
 0x22d   : > { %785 = vperm.xlu1 %1408, %v1422_v9  }
 0x231   : > { %790 = vperm.xlu1 %1408, %v1424_v10  }
 0x299   : > { %v750_v13 = vpop.xlane.xlu1 %749 }
 0x29a   : > { %v760_v15 = vadd.f32 %v750_v13, %v744_v12 }
 0x29c   : > { %765 = vst.msk [vmem:[#allocation3] sm:$0xff] %vm341_vm2, %v760_v15 }
 0x29d   : > { %v753_v17 = vpop.xlane.xlu0 %752 }
 0x29e   : > { %v761_v19 = vadd.f32 %v753_v17, %v745_v16 }
 0x2a0   : > { %766 = vst.msk [vmem:[#allocation3 + $0x8] sm:$0xff] %vm341_vm2, %v761_v19 }
 0x2a1   : > { %v756_v21 = vpop.xlane.xlu1 %755 }
 0x2a2   : > { %v762_v23 = vadd.f32 %v756_v21, %v746_v20 }
 0x2a3   : > { %v1104_v24 = vld [vmem:[#allocation3] sm:$0xff] }
 0x2a4   : > { %767 = vst.msk [vmem:[#allocation3 + $0x10] sm:$0xff] %vm341_vm2, %v762_v23  ;;  %1425 = vrcp.f32 %v1104_v24 }
 0x2a5   : > { %v759_v26 = vpop.xlane.xlu1 %758  ;;  %v781_v39 = vpop.permute.xlu0 %780 }
 0x2a6   : > { %v763_v27 = vadd.f32 %v759_v26, %v747_v25  ;;  %v794_v44 = vmul.f32 %v781_v39, %v770_v38 }
 0x2a7   : > { %v1105_v28 = vld [vmem:[#allocation3 + $0x8] sm:$0xff] }
 0x2a8   : > { %768 = vst.msk [vmem:[#allocation3 + $0x18] sm:$0xff] %vm341_vm2, %v763_v27  ;;  %1427 = vrcp.f32 %v1105_v28 }
 0x2a9   : > { %v776_v36 = vpop.permute.xlu1 %775 }
 0x2aa   : > { %v793_v37 = vmul.f32 %v776_v36, %v769_v35 }
 0x2ab   : > { %v1106_v29 = vld [vmem:[#allocation3 + $0x10] sm:$0xff] }
 0x2ac   : > { %1429 = vrcp.f32 %v1106_v29 }
 0x2ad   : > { %v786_v43 = vpop.permute.xlu1 %785 }
 0x2ae   : > { %v1426_v30 = vpop.eup %1425  ;;  %v795_v49 = vmul.f32 %v786_v43, %v771_v45 }
 0x2af   : > { %1118 = vperm.xlu1 %1408, %v1426_v30   ;;  %v1107_v31 = vld [vmem:[#allocation3 + $0x18] sm:$0xff] }
 0x2b0   : > { %1431 = vrcp.f32 %v1107_v31 }
 0x2b1   : > { %v791_v51 = vpop.permute.xlu1 %790 }
 0x2b2   : > { %v1428_v32 = vpop.eup %1427  ;;  %v796_v55 = vmul.f32 %v791_v51, %v772_v50 }
 0x2b3   : > { %1123 = vperm.xlu0 %1407, %v1428_v32  }
 0x2b6   : > { %v1430_v33 = vpop.eup %1429 }
 0x2b7   : > { %1128 = vperm.xlu1 %1408, %v1430_v33  }
 0x2ba   : > { %v1432_v34 = vpop.eup %1431 }
 0x2bb   : > { %1133 = vperm.xlu0 %1407, %v1432_v34  }
 0x2de   : > { %v866_v40 = vpop.f32.mrb[4].mxu0 }
 0x2df   : > { %v1089_v41 = vadd.f32 %v866_v40, %v793_v37  ;;  %v1363_v42 = vpop.f32.mrb[5].mxu0 }
 0x2e1   : > { %1093 = vst.msk [vmem:[#allocation4] sm:$0xff] %vm350_vm0, %v1089_v41 }
 0x2e2   : > { %v939_v46 = vpop.f32.mrb[4].mxu1 }
 0x2e3   : > { %v1090_v47 = vadd.f32 %v939_v46, %v794_v44  ;;  %v1368_v48 = vpop.f32.mrb[5].mxu1 }
 0x2e5   : > { %1094 = vst.msk [vmem:[#allocation4 + $0x8] sm:$0xff] %vm350_vm0, %v1090_v47 }
 0x2e6   : > { %v1012_v52 = vpop.f32.mrb[6].mxu0 }
 0x2e7   : > { %v1091_v53 = vadd.f32 %v1012_v52, %v795_v49  ;;  %v1373_v54 = vpop.f32.mrb[7].mxu0 }
 0x2e8   : > { %v1112_v60 = vld [vmem:[#allocation4] sm:$0xff] }
 0x2e9   : > { %1095 = vst.msk [vmem:[#allocation4 + $0x10] sm:$0xff] %vm350_vm0, %v1091_v53 }
 0x2ea   : > { %v1085_v56 = vpop.f32.mrb[6].mxu1 }
 0x2eb   : > { %v1092_v57 = vadd.f32 %v1085_v56, %v796_v55  ;;  %v1378_v58 = vpop.f32.mrb[7].mxu1 }
 0x2ec   : > { %v1113_v62 = vld [vmem:[#allocation4 + $0x8] sm:$0xff] }
 0x2ed   : > { %1096 = vst.msk [vmem:[#allocation4 + $0x18] sm:$0xff] %vm350_vm0, %v1092_v57 }
 0x2f0   : > { %v1114_v3 = vld [vmem:[#allocation4 + $0x10] sm:$0xff] }
 0x2f4   : > { %v1115_v0 = vld [vmem:[#allocation4 + $0x18] sm:$0xff] }
 0x32e   : > { %v1119_v59 = vpop.permute.xlu1 %1118 }
 0x32f   : > { %v1136_v61 = vmul.f32 %v1119_v59, %v1112_v60 }
 0x331   : > { %1140 = vst.msk [vmem:[%s335_s28] sm:$0xff] %vm350_vm0, %v1136_v61 }
 0x332   : > { %v1124_v63 = vpop.permute.xlu0 %1123 }
 0x333   : > { %v1137_v1 = vmul.f32 %v1124_v63, %v1113_v62 }
 0x335   : > { %1141 = vst.msk [vmem:[%s335_s28 + $0x8] sm:$0xff] %vm350_vm0, %v1137_v1 }
 0x336   : > { %v1129_v2 = vpop.permute.xlu1 %1128 }
 0x337   : > { %v1138_v4 = vmul.f32 %v1129_v2, %v1114_v3 }
 0x339   : > { %1142 = vst.msk [vmem:[%s335_s28 + $0x10] sm:$0xff] %vm350_vm0, %v1138_v4 }
 0x33a   : > { %v1134_v5 = vpop.permute.xlu0 %1133 }
 0x33b   : > { %v1139_v6 = vmul.f32 %v1134_v5, %v1115_v0 }
 0x33d   : > { %1143 = vst.msk [vmem:[%s335_s28 + $0x18] sm:$0xff] %vm350_vm0, %v1139_v6 }
 0x33e PF: > { %s13_s14 = sadd.s32 1, %s1455_s14   ;;  %s1634_s12 = smov %s1451_s13 }
 0x33f   : > { %p10_p5 = scmp.ge.s32.totalorder %s13_s14, 4   ;;  %s1635_s13 = smov %s1637_s15 }
 0x341   :  { %12 = sbr.rel (!%p10_p5) target bundleno = 2 (0x2), region = 76 }

</bundles_post_ra>
